<compile_context>
chip_gen: v7x
topology: tpu7x:2x2x1
jax: 0.10.0
libtpu: 0.0.40
codegen_flags: <defaults>
</compile_context>

<pallas_src>
import functools

import numpy as np
import jax
import jax.numpy as jnp
from jax import lax
from jax.experimental import pallas as pl
from jax.experimental.pallas import tpu as pltpu

EPS = 1e-5


# ----------------------------- Pallas kernel -----------------------------
def _sb_kernel(x_ref, w1_ref, b1_ref, taps_ref, masks_ref, w2_ref, b3_ref,
               *rest, N, H, W, stride, mxu_dtype):
    if stride > 1:
        sel_ref, o_ref = rest
    else:
        (o_ref,) = rest

    HW = H * W
    L = N * HW

    # grouped 1x1 conv #1 (channel shuffle + BN1 scale folded into rows)
    # + bias + ReLU6.  Operands arrive already in mxu_dtype; accumulate f32.
    h = jnp.dot(w1_ref[...], x_ref[...],
                preferred_element_type=jnp.float32)              # (Cmid, L)
    h = jnp.clip(h + b1_ref[...], 0.0, 6.0)                      # f32 VPU math

    # depthwise 3x3, padding=1 over the batched slab: XLU lane rolls +
    # host-precomputed border masks (one multiply per tap, no iota/select).
    acc = h * taps_ref[4]                    # center tap, mask is all-ones
    for dh in (-1, 0, 1):
        for dw in (-1, 0, 1):
            if dh == 0 and dw == 0:
                continue
            t = (dh + 1) * 3 + (dw + 1)
            s = dh * W + dw                  # flat spatial shift
            shifted = pltpu.roll(h, (-s) % L, axis=1)
            acc = acc + shifted * taps_ref[t] * masks_ref[t]

    w2 = w2_ref[...]
    b3 = b3_ref[...]
    if stride == 1:
        # grouped 1x1 conv #2 (BN2 bias + BN3 folded) + ReLU6, lane-dense store
        g = jnp.dot(w2, acc.astype(mxu_dtype),
                    preferred_element_type=jnp.float32)          # (Cout, L)
        o_ref[...] = jnp.clip(g + b3, 0.0, 6.0).astype(o_ref.dtype)
    else:
        # exact 0/1 selection matmul per image, then gconv2; each image's
        # result lands at a static lane offset of the lane-dense output block.
        HWo = o_ref.shape[1] // N
        selm = sel_ref[...]                                      # (HW, HWo)
        for n in range(N):
            a_n = acc[:, n * HW:(n + 1) * HW].astype(mxu_dtype)
            d_n = jnp.dot(a_n, selm, preferred_element_type=jnp.float32)
            g_n = jnp.dot(w2, d_n.astype(mxu_dtype),
                          preferred_element_type=jnp.float32)    # (Cout, HWo)
            o_ref[:, n * HWo:(n + 1) * HWo] = \
                jnp.clip(g_n + b3, 0.0, 6.0).astype(o_ref.dtype)


def shuffle_bottleneck_pallas(x_nchw, params, *, stride,
                              mxu_dtype=jnp.bfloat16):
    W1f, b1p, tapsT, masks, W2f, b3p, sel = params
    N, Cin, H, W = x_nchw.shape
    Cmid, Cout = W1f.shape[0], W2f.shape[0]
    HW = H * W
    Ho = (H + 2 - 3) // stride + 1
    Wo = (W + 2 - 3) // stride + 1
    HWo = Ho * Wo
    L, Lo = N * HW, N * HWo

    # Layout plumbing only: (N, Cin, H, W) -> channel-major slab (Cin, N*HW)
    # so the whole batch rides the lane axis in one grid step.
    x_slab = jnp.transpose(x_nchw, (1, 0, 2, 3)).reshape(Cin, L)
    x_slab = x_slab.astype(mxu_dtype)

    inputs = [x_slab, W1f.astype(mxu_dtype), b1p, tapsT, masks,
              W2f.astype(mxu_dtype), b3p]
    in_specs = [
        pl.BlockSpec((Cin, L), lambda i: (0, 0)),
        pl.BlockSpec((Cmid, Cin), lambda i: (0, 0)),
        pl.BlockSpec((Cmid, 1), lambda i: (0, 0)),
        pl.BlockSpec((9, Cmid, 1), lambda i: (0, 0, 0)),
        pl.BlockSpec((9, 1, L), lambda i: (0, 0, 0)),
        pl.BlockSpec((Cout, Cmid), lambda i: (0, 0)),
        pl.BlockSpec((Cout, 1), lambda i: (0, 0)),
    ]
    if stride > 1:
        inputs.append(sel.astype(mxu_dtype))
        in_specs.append(pl.BlockSpec((HW, HWo), lambda i: (0, 0)))

    out_slab = pl.pallas_call(
        functools.partial(_sb_kernel, N=N, H=H, W=W, stride=stride,
                          mxu_dtype=mxu_dtype),
        out_shape=jax.ShapeDtypeStruct((Cout, Lo), jnp.float32),
        grid=(1,),
        in_specs=in_specs,
        out_specs=pl.BlockSpec((Cout, Lo), lambda i: (0, 0)),
        compiler_params=pltpu.CompilerParams(
            dimension_semantics=("arbitrary",)),
    )(*inputs)

    # (Cout, N*HWo) -> NCHW (free reshape + tiny wrapper transpose)
    return jnp.transpose(out_slab.reshape(Cout, N, Ho, Wo), (1, 0, 2, 3))


# ------------------------------- param prep --------------------------------
def _dense_grouped_1x1(w, groups):
    # torch OIHW (Cout, Cin//groups, 1, 1) -> dense block-diagonal (Cout, Cin)
    w = np.asarray(w)
    Cout, Cin_g = w.shape[0], w.shape[1]
    Cin = Cin_g * groups
    Cout_g = Cout // groups
    dense = np.zeros((Cout, Cin), np.float32)
    for g in range(groups):
        dense[g * Cout_g:(g + 1) * Cout_g, g * Cin_g:(g + 1) * Cin_g] = \
            w[g * Cout_g:(g + 1) * Cout_g, :, 0, 0]
    return dense


def _fold_bn(gamma, beta, mean, var):
    s = np.asarray(gamma) / np.sqrt(np.asarray(var) + EPS)
    b = np.asarray(beta) - np.asarray(mean) * s
    return s.astype(np.float32), b.astype(np.float32)


def _border_masks(N, H, W):
    # (9, 1, N*H*W) validity masks for the 3x3 taps on the lane-batched slab.
    # Built from pos % HW, so they also kill roll leakage across images.
    HW = H * W
    q = np.arange(N * HW) % HW
    r, c = q // W, q % W
    masks = np.empty((9, 1, N * HW), np.float32)
    for dh in (-1, 0, 1):
        for dw in (-1, 0, 1):
            ok = ((r + dh >= 0) & (r + dh <= H - 1) &
                  (c + dw >= 0) & (c + dw <= W - 1))
            masks[(dh + 1) * 3 + (dw + 1), 0, :] = ok.astype(np.float32)
    return masks


def _stride_select(H, W, stride):
    # 0/1 matrix picking the strided output positions of the full-res dw conv.
    Ho = (H + 2 - 3) // stride + 1
    Wo = (W + 2 - 3) // stride + 1
    sel = np.zeros((H * W, Ho * Wo), np.float32)
    for io in range(Ho):
        for jo in range(Wo):
            sel[io * stride * W + jo * stride, io * Wo + jo] = 1.0
    return sel


def prepare_params(w1, bn1, wdw, bn2, w2, bn3, *, groups, N, H, W, stride):
    mid_ch = int(w1.shape[0])
    s1, b1 = _fold_bn(*bn1)
    s2, b2 = _fold_bn(*bn2)
    s3, b3 = _fold_bn(*bn3)

    # channel shuffle permutation (applied to gconv1 output channels)
    perm = np.arange(mid_ch).reshape(groups, mid_ch // groups).T.reshape(-1)

    W1blk = _dense_grouped_1x1(w1, groups)                  # (mid, in)
    W1f = (s1[:, None] * W1blk)[perm]                       # BN1 scale + shuffle
    b1p = b1[perm][:, None]                                 # (mid, 1)

    taps = np.asarray(wdw)[:, 0, :, :].reshape(mid_ch, 9)
    tapsT = (s2[:, None] * taps).T.reshape(9, mid_ch, 1)    # BN2 scale folded

    masks = _border_masks(N, H, W)                          # (9, 1, N*HW)

    W2blk = _dense_grouped_1x1(w2, groups)                  # (out, mid)
    W2f = s3[:, None] * W2blk                               # BN3 scale folded
    b3p = (s3 * (W2blk @ b2) + b3)[:, None]                 # BN2 bias folded

    sel = _stride_select(H, W, stride) if stride > 1 else None

    to_j = lambda a: None if a is None else jnp.asarray(a, jnp.float32)
    return tuple(to_j(a) for a in (W1f, b1p, tapsT, masks, W2f, b3p, sel))


# ---------------------- pure-JAX reference (NCHW) --------------------------
def _bn_nchw(y, gamma, beta, mean, var):
    inv = (gamma / jnp.sqrt(var + EPS))[None, :, None, None]
    return (y - mean[None, :, None, None]) * inv + beta[None, :, None, None]


def shuffle_bottleneck_ref(x, raw, *, stride, groups):
    w1, bn1, wdw, bn2, w2, bn3 = raw
    y = lax.conv_general_dilated(x, w1, (1, 1), 'VALID',
                                 dimension_numbers=('NCHW', 'OIHW', 'NCHW'),
                                 feature_group_count=groups)
    y = jnp.clip(_bn_nchw(y, *bn1), 0.0, 6.0)
    N, C, H, W = y.shape
    y = y.reshape(N, groups, C // groups, H, W).transpose(0, 2, 1, 3, 4)
    y = y.reshape(N, C, H, W)
    y = lax.conv_general_dilated(y, wdw, (stride, stride), ((1, 1), (1, 1)),
                                 dimension_numbers=('NCHW', 'OIHW', 'NCHW'),
                                 feature_group_count=C)
    y = _bn_nchw(y, *bn2)
    y = lax.conv_general_dilated(y, w2, (1, 1), 'VALID',
                                 dimension_numbers=('NCHW', 'OIHW', 'NCHW'),
                                 feature_group_count=groups)
    y = _bn_nchw(y, *bn3)
    return jnp.clip(y, 0.0, 6.0)


# --------------------------------- main ------------------------------------
if __name__ == "__main__":
    in_ch, out_ch, groups = 16, 32, 4
    mid_ch = out_ch // 4
    N, H, W = 2, 16, 16

    key = jax.random.PRNGKey(0)
    kx, k1, k2, k3, kb1, kb2, kb3 = jax.random.split(key, 7)

    x = jax.random.normal(kx, (N, in_ch, H, W), jnp.float32)

    # deterministic synthetic parameters (shapes from the module __init__)
    w1 = 0.4 * jax.random.normal(k1, (mid_ch, in_ch // groups, 1, 1), jnp.float32)
    wdw = 0.4 * jax.random.normal(k2, (mid_ch, 1, 3, 3), jnp.float32)
    w2 = 0.4 * jax.random.normal(k3, (out_ch, mid_ch // groups, 1, 1), jnp.float32)

    def bn_init(k, c):
        ka, kb, kc, kd = jax.random.split(k, 4)
        gamma = 1.0 + 0.1 * jax.random.normal(ka, (c,), jnp.float32)
        beta = 0.1 * jax.random.normal(kb, (c,), jnp.float32)
        mean = 0.1 * jax.random.normal(kc, (c,), jnp.float32)
        var = 0.5 + 0.5 * jnp.abs(jax.random.normal(kd, (c,), jnp.float32))
        return gamma, beta, mean, var

    bn1 = bn_init(kb1, mid_ch)
    bn2 = bn_init(kb2, mid_ch)
    bn3 = bn_init(kb3, out_ch)
    raw = (w1, bn1, wdw, bn2, w2, bn3)

    for stride in (1, 2):
        params = prepare_params(w1, bn1, wdw, bn2, w2, bn3,
                                groups=groups, N=N, H=H, W=W, stride=stride)
        ref = jax.block_until_ready(
            shuffle_bottleneck_ref(x, raw, stride=stride, groups=groups))

        # exact-algorithm check: f32 MXU operands, tight tolerance
        out32 = jax.block_until_ready(
            shuffle_bottleneck_pallas(x, params, stride=stride,
                                      mxu_dtype=jnp.float32))
        assert out32.shape == ref.shape
        np.testing.assert_allclose(np.asarray(out32), np.asarray(ref),
                                   rtol=5e-3, atol=5e-3)

        # fast path: bf16 MXU operands (native on v6e/v7x); tolerance loosened
        # only for the expected bf16 rounding, algorithm already verified above.
        outbf = jax.block_until_ready(
            shuffle_bottleneck_pallas(x, params, stride=stride,
                                      mxu_dtype=jnp.bfloat16))
        assert outbf.shape == ref.shape
        np.testing.assert_allclose(np.asarray(outbf), np.asarray(ref),
                                   rtol=3e-2, atol=1e-1)

    print("KERNEL_OK")
</pallas_src>

<mosaic_0001>
module attributes {stable_mosaic.version = 11 : i64} {
  func.func @_sb_kernel(%arg0: i32, %arg1: memref<16x512xf32, #tpu.memory_space<vmem>>, %arg2: memref<8x16xf32, #tpu.memory_space<vmem>>, %arg3: memref<8x1xf32, #tpu.memory_space<vmem>>, %arg4: memref<9x8x1xf32, #tpu.memory_space<vmem>>, %arg5: memref<9x1x512xf32, #tpu.memory_space<vmem>>, %arg6: memref<32x8xf32, #tpu.memory_space<vmem>>, %arg7: memref<32x1xf32, #tpu.memory_space<vmem>>, %arg8: memref<32x512xf32, #tpu.memory_space<vmem>>) attributes {dimension_semantics = [#tpu.dimension_semantics<arbitrary>], iteration_bounds = array<i64: 1>, scalar_prefetch = 0 : i64, scratch_operands = 0 : i64, tpu.core_type = #tpu.core_type<tc>, window_params = [{pipeline_mode = #tpu.pipeline_mode<synchronous>, transform_indices = @transform_0, window_bounds = array<i64: 16, 512>}, {pipeline_mode = #tpu.pipeline_mode<synchronous>, transform_indices = @transform_1, window_bounds = array<i64: 8, 16>}, {pipeline_mode = #tpu.pipeline_mode<synchronous>, transform_indices = @transform_2, window_bounds = array<i64: 8, 1>}, {pipeline_mode = #tpu.pipeline_mode<synchronous>, transform_indices = @transform_3, window_bounds = array<i64: 9, 8, 1>}, {pipeline_mode = #tpu.pipeline_mode<synchronous>, transform_indices = @transform_4, window_bounds = array<i64: 9, 1, 512>}, {pipeline_mode = #tpu.pipeline_mode<synchronous>, transform_indices = @transform_5, window_bounds = array<i64: 32, 8>}, {pipeline_mode = #tpu.pipeline_mode<synchronous>, transform_indices = @transform_6, window_bounds = array<i64: 32, 1>}, {pipeline_mode = #tpu.pipeline_mode<synchronous>, transform_indices = @transform_7, window_bounds = array<i64: 32, 512>}]} {
    %c0 = arith.constant 0 : index
    %c0_0 = arith.constant 0 : index
    %0 = vector.load %arg2[%c0, %c0_0] : memref<8x16xf32, #tpu.memory_space<vmem>>, vector<8x16xf32>
    %c0_1 = arith.constant 0 : index
    %c0_2 = arith.constant 0 : index
    %1 = vector.load %arg1[%c0_1, %c0_2] : memref<16x512xf32, #tpu.memory_space<vmem>>, vector<16x512xf32>
    %cst = arith.constant dense<0.000000e+00> : vector<8x512xf32>
    %2 = tpu.matmul %0, %1, %cst {dimension_numbers = #tpu.dot_dimension_numbers<[1], [0], [0], [1], [0, 0, 1, 1], [], []>} : vector<8x16xf32>, vector<16x512xf32>, vector<8x512xf32> -> vector<8x512xf32>
    %c0_3 = arith.constant 0 : index
    %c0_4 = arith.constant 0 : index
    %3 = vector.load %arg3[%c0_3, %c0_4] : memref<8x1xf32, #tpu.memory_space<vmem>>, vector<8x1xf32>
    %4 = vector.broadcast %3 : vector<8x1xf32> to vector<8x512xf32>
    %5 = arith.addf %2, %4 : vector<8x512xf32>
    %cst_5 = arith.constant 0.000000e+00 : f32
    %cst_6 = arith.constant 6.000000e+00 : f32
    %6 = vector.broadcast %cst_5 : f32 to vector<8x512xf32>
    %7 = arith.maximumf %6, %5 : vector<8x512xf32>
    %8 = vector.broadcast %cst_6 : f32 to vector<8x512xf32>
    %9 = arith.minimumf %8, %7 : vector<8x512xf32>
    %c4 = arith.constant 4 : index
    %c0_7 = arith.constant 0 : index
    %c0_8 = arith.constant 0 : index
    %10 = vector.load %arg4[%c4, %c0_7, %c0_8] : memref<9x8x1xf32, #tpu.memory_space<vmem>>, vector<1x8x1xf32>
    %11 = vector.shape_cast %10 : vector<1x8x1xf32> to vector<8x1xf32>
    %12 = vector.broadcast %11 : vector<8x1xf32> to vector<8x512xf32>
    %13 = arith.mulf %9, %12 : vector<8x512xf32>
    %c17_i32 = arith.constant 17 : i32
    %14 = tpu.dynamic_rotate %9 by %c17_i32 dim 1 : vector<8x512xf32>, i32 -> vector<8x512xf32>
    %c0_9 = arith.constant 0 : index
    %c0_10 = arith.constant 0 : index
    %c0_11 = arith.constant 0 : index
    %15 = vector.load %arg4[%c0_9, %c0_10, %c0_11] : memref<9x8x1xf32, #tpu.memory_space<vmem>>, vector<1x8x1xf32>
    %16 = vector.shape_cast %15 : vector<1x8x1xf32> to vector<8x1xf32>
    %17 = vector.broadcast %16 : vector<8x1xf32> to vector<8x512xf32>
    %18 = arith.mulf %14, %17 : vector<8x512xf32>
    %c0_12 = arith.constant 0 : index
    %c0_13 = arith.constant 0 : index
    %c0_14 = arith.constant 0 : index
    %19 = vector.load %arg5[%c0_12, %c0_13, %c0_14] : memref<9x1x512xf32, #tpu.memory_space<vmem>>, vector<1x1x512xf32>
    %20 = vector.shape_cast %19 : vector<1x1x512xf32> to vector<1x512xf32>
    %21 = vector.broadcast %20 : vector<1x512xf32> to vector<8x512xf32>
    %22 = arith.mulf %18, %21 : vector<8x512xf32>
    %23 = arith.addf %13, %22 : vector<8x512xf32>
    %c16_i32 = arith.constant 16 : i32
    %24 = tpu.dynamic_rotate %9 by %c16_i32 dim 1 : vector<8x512xf32>, i32 -> vector<8x512xf32>
    %c1 = arith.constant 1 : index
    %c0_15 = arith.constant 0 : index
    %c0_16 = arith.constant 0 : index
    %25 = vector.load %arg4[%c1, %c0_15, %c0_16] : memref<9x8x1xf32, #tpu.memory_space<vmem>>, vector<1x8x1xf32>
    %26 = vector.shape_cast %25 : vector<1x8x1xf32> to vector<8x1xf32>
    %27 = vector.broadcast %26 : vector<8x1xf32> to vector<8x512xf32>
    %28 = arith.mulf %24, %27 : vector<8x512xf32>
    %c1_17 = arith.constant 1 : index
    %c0_18 = arith.constant 0 : index
    %c0_19 = arith.constant 0 : index
    %29 = vector.load %arg5[%c1_17, %c0_18, %c0_19] : memref<9x1x512xf32, #tpu.memory_space<vmem>>, vector<1x1x512xf32>
    %30 = vector.shape_cast %29 : vector<1x1x512xf32> to vector<1x512xf32>
    %31 = vector.broadcast %30 : vector<1x512xf32> to vector<8x512xf32>
    %32 = arith.mulf %28, %31 : vector<8x512xf32>
    %33 = arith.addf %23, %32 : vector<8x512xf32>
    %c15_i32 = arith.constant 15 : i32
    %34 = tpu.dynamic_rotate %9 by %c15_i32 dim 1 : vector<8x512xf32>, i32 -> vector<8x512xf32>
    %c2 = arith.constant 2 : index
    %c0_20 = arith.constant 0 : index
    %c0_21 = arith.constant 0 : index
    %35 = vector.load %arg4[%c2, %c0_20, %c0_21] : memref<9x8x1xf32, #tpu.memory_space<vmem>>, vector<1x8x1xf32>
    %36 = vector.shape_cast %35 : vector<1x8x1xf32> to vector<8x1xf32>
    %37 = vector.broadcast %36 : vector<8x1xf32> to vector<8x512xf32>
    %38 = arith.mulf %34, %37 : vector<8x512xf32>
    %c2_22 = arith.constant 2 : index
    %c0_23 = arith.constant 0 : index
    %c0_24 = arith.constant 0 : index
    %39 = vector.load %arg5[%c2_22, %c0_23, %c0_24] : memref<9x1x512xf32, #tpu.memory_space<vmem>>, vector<1x1x512xf32>
    %40 = vector.shape_cast %39 : vector<1x1x512xf32> to vector<1x512xf32>
    %41 = vector.broadcast %40 : vector<1x512xf32> to vector<8x512xf32>
    %42 = arith.mulf %38, %41 : vector<8x512xf32>
    %43 = arith.addf %33, %42 : vector<8x512xf32>
    %c1_i32 = arith.constant 1 : i32
    %44 = tpu.dynamic_rotate %9 by %c1_i32 dim 1 : vector<8x512xf32>, i32 -> vector<8x512xf32>
    %c3 = arith.constant 3 : index
    %c0_25 = arith.constant 0 : index
    %c0_26 = arith.constant 0 : index
    %45 = vector.load %arg4[%c3, %c0_25, %c0_26] : memref<9x8x1xf32, #tpu.memory_space<vmem>>, vector<1x8x1xf32>
    %46 = vector.shape_cast %45 : vector<1x8x1xf32> to vector<8x1xf32>
    %47 = vector.broadcast %46 : vector<8x1xf32> to vector<8x512xf32>
    %48 = arith.mulf %44, %47 : vector<8x512xf32>
    %c3_27 = arith.constant 3 : index
    %c0_28 = arith.constant 0 : index
    %c0_29 = arith.constant 0 : index
    %49 = vector.load %arg5[%c3_27, %c0_28, %c0_29] : memref<9x1x512xf32, #tpu.memory_space<vmem>>, vector<1x1x512xf32>
    %50 = vector.shape_cast %49 : vector<1x1x512xf32> to vector<1x512xf32>
    %51 = vector.broadcast %50 : vector<1x512xf32> to vector<8x512xf32>
    %52 = arith.mulf %48, %51 : vector<8x512xf32>
    %53 = arith.addf %43, %52 : vector<8x512xf32>
    %c511_i32 = arith.constant 511 : i32
    %54 = tpu.dynamic_rotate %9 by %c511_i32 dim 1 : vector<8x512xf32>, i32 -> vector<8x512xf32>
    %c5 = arith.constant 5 : index
    %c0_30 = arith.constant 0 : index
    %c0_31 = arith.constant 0 : index
    %55 = vector.load %arg4[%c5, %c0_30, %c0_31] : memref<9x8x1xf32, #tpu.memory_space<vmem>>, vector<1x8x1xf32>
    %56 = vector.shape_cast %55 : vector<1x8x1xf32> to vector<8x1xf32>
    %57 = vector.broadcast %56 : vector<8x1xf32> to vector<8x512xf32>
    %58 = arith.mulf %54, %57 : vector<8x512xf32>
    %c5_32 = arith.constant 5 : index
    %c0_33 = arith.constant 0 : index
    %c0_34 = arith.constant 0 : index
    %59 = vector.load %arg5[%c5_32, %c0_33, %c0_34] : memref<9x1x512xf32, #tpu.memory_space<vmem>>, vector<1x1x512xf32>
    %60 = vector.shape_cast %59 : vector<1x1x512xf32> to vector<1x512xf32>
    %61 = vector.broadcast %60 : vector<1x512xf32> to vector<8x512xf32>
    %62 = arith.mulf %58, %61 : vector<8x512xf32>
    %63 = arith.addf %53, %62 : vector<8x512xf32>
    %c497_i32 = arith.constant 497 : i32
    %64 = tpu.dynamic_rotate %9 by %c497_i32 dim 1 : vector<8x512xf32>, i32 -> vector<8x512xf32>
    %c6 = arith.constant 6 : index
    %c0_35 = arith.constant 0 : index
    %c0_36 = arith.constant 0 : index
    %65 = vector.load %arg4[%c6, %c0_35, %c0_36] : memref<9x8x1xf32, #tpu.memory_space<vmem>>, vector<1x8x1xf32>
    %66 = vector.shape_cast %65 : vector<1x8x1xf32> to vector<8x1xf32>
    %67 = vector.broadcast %66 : vector<8x1xf32> to vector<8x512xf32>
    %68 = arith.mulf %64, %67 : vector<8x512xf32>
    %c6_37 = arith.constant 6 : index
    %c0_38 = arith.constant 0 : index
    %c0_39 = arith.constant 0 : index
    %69 = vector.load %arg5[%c6_37, %c0_38, %c0_39] : memref<9x1x512xf32, #tpu.memory_space<vmem>>, vector<1x1x512xf32>
    %70 = vector.shape_cast %69 : vector<1x1x512xf32> to vector<1x512xf32>
    %71 = vector.broadcast %70 : vector<1x512xf32> to vector<8x512xf32>
    %72 = arith.mulf %68, %71 : vector<8x512xf32>
    %73 = arith.addf %63, %72 : vector<8x512xf32>
    %c496_i32 = arith.constant 496 : i32
    %74 = tpu.dynamic_rotate %9 by %c496_i32 dim 1 : vector<8x512xf32>, i32 -> vector<8x512xf32>
    %c7 = arith.constant 7 : index
    %c0_40 = arith.constant 0 : index
    %c0_41 = arith.constant 0 : index
    %75 = vector.load %arg4[%c7, %c0_40, %c0_41] : memref<9x8x1xf32, #tpu.memory_space<vmem>>, vector<1x8x1xf32>
    %76 = vector.shape_cast %75 : vector<1x8x1xf32> to vector<8x1xf32>
    %77 = vector.broadcast %76 : vector<8x1xf32> to vector<8x512xf32>
    %78 = arith.mulf %74, %77 : vector<8x512xf32>
    %c7_42 = arith.constant 7 : index
    %c0_43 = arith.constant 0 : index
    %c0_44 = arith.constant 0 : index
    %79 = vector.load %arg5[%c7_42, %c0_43, %c0_44] : memref<9x1x512xf32, #tpu.memory_space<vmem>>, vector<1x1x512xf32>
    %80 = vector.shape_cast %79 : vector<1x1x512xf32> to vector<1x512xf32>
    %81 = vector.broadcast %80 : vector<1x512xf32> to vector<8x512xf32>
    %82 = arith.mulf %78, %81 : vector<8x512xf32>
    %83 = arith.addf %73, %82 : vector<8x512xf32>
    %c495_i32 = arith.constant 495 : i32
    %84 = tpu.dynamic_rotate %9 by %c495_i32 dim 1 : vector<8x512xf32>, i32 -> vector<8x512xf32>
    %c8 = arith.constant 8 : index
    %c0_45 = arith.constant 0 : index
    %c0_46 = arith.constant 0 : index
    %85 = vector.load %arg4[%c8, %c0_45, %c0_46] : memref<9x8x1xf32, #tpu.memory_space<vmem>>, vector<1x8x1xf32>
    %86 = vector.shape_cast %85 : vector<1x8x1xf32> to vector<8x1xf32>
    %87 = vector.broadcast %86 : vector<8x1xf32> to vector<8x512xf32>
    %88 = arith.mulf %84, %87 : vector<8x512xf32>
    %c8_47 = arith.constant 8 : index
    %c0_48 = arith.constant 0 : index
    %c0_49 = arith.constant 0 : index
    %89 = vector.load %arg5[%c8_47, %c0_48, %c0_49] : memref<9x1x512xf32, #tpu.memory_space<vmem>>, vector<1x1x512xf32>
    %90 = vector.shape_cast %89 : vector<1x1x512xf32> to vector<1x512xf32>
    %91 = vector.broadcast %90 : vector<1x512xf32> to vector<8x512xf32>
    %92 = arith.mulf %88, %91 : vector<8x512xf32>
    %93 = arith.addf %83, %92 : vector<8x512xf32>
    %c0_50 = arith.constant 0 : index
    %c0_51 = arith.constant 0 : index
    %94 = vector.load %arg6[%c0_50, %c0_51] : memref<32x8xf32, #tpu.memory_space<vmem>>, vector<32x8xf32>
    %c0_52 = arith.constant 0 : index
    %c0_53 = arith.constant 0 : index
    %95 = vector.load %arg7[%c0_52, %c0_53] : memref<32x1xf32, #tpu.memory_space<vmem>>, vector<32x1xf32>
    %cst_54 = arith.constant dense<0.000000e+00> : vector<32x512xf32>
    %96 = tpu.matmul %94, %93, %cst_54 {dimension_numbers = #tpu.dot_dimension_numbers<[1], [0], [0], [1], [0, 0, 1, 1], [], []>} : vector<32x8xf32>, vector<8x512xf32>, vector<32x512xf32> -> vector<32x512xf32>
    %97 = vector.broadcast %95 : vector<32x1xf32> to vector<32x512xf32>
    %98 = arith.addf %96, %97 : vector<32x512xf32>
    %cst_55 = arith.constant 0.000000e+00 : f32
    %cst_56 = arith.constant 6.000000e+00 : f32
    %99 = vector.broadcast %cst_55 : f32 to vector<32x512xf32>
    %100 = arith.maximumf %99, %98 : vector<32x512xf32>
    %101 = vector.broadcast %cst_56 : f32 to vector<32x512xf32>
    %102 = arith.minimumf %101, %100 : vector<32x512xf32>
    %c0_57 = arith.constant 0 : index
    %c0_58 = arith.constant 0 : index
    %103 = vector.load %arg8[%c0_57, %c0_58] : memref<32x512xf32, #tpu.memory_space<vmem>>, vector<32x512xf32>
    tpu.vector_store %arg8[%c0_57, %c0_58], %102 {strides = array<i32>} : memref<32x512xf32, #tpu.memory_space<vmem>>, vector<32x512xf32>,
    return
  }
  func.func @transform_0(%arg0: i32) -> (i32, i32) {
    %c0_i32 = arith.constant 0 : i32
    %c0_i32_0 = arith.constant 0 : i32
    %c0_i32_1 = arith.constant 0 : i32
    return %c0_i32, %c0_i32_0 : i32, i32
  }
  func.func @transform_1(%arg0: i32) -> (i32, i32) {
    %c0_i32 = arith.constant 0 : i32
    %c0_i32_0 = arith.constant 0 : i32
    %c0_i32_1 = arith.constant 0 : i32
    return %c0_i32, %c0_i32_0 : i32, i32
  }
  func.func @transform_2(%arg0: i32) -> (i32, i32) {
    %c0_i32 = arith.constant 0 : i32
    %c0_i32_0 = arith.constant 0 : i32
    %c0_i32_1 = arith.constant 0 : i32
    return %c0_i32, %c0_i32_0 : i32, i32
  }
  func.func @transform_3(%arg0: i32) -> (i32, i32, i32) {
    %c0_i32 = arith.constant 0 : i32
    %c0_i32_0 = arith.constant 0 : i32
    %c0_i32_1 = arith.constant 0 : i32
    %c0_i32_2 = arith.constant 0 : i32
    return %c0_i32, %c0_i32_0, %c0_i32_1 : i32, i32, i32
  }
  func.func @transform_4(%arg0: i32) -> (i32, i32, i32) {
    %c0_i32 = arith.constant 0 : i32
    %c0_i32_0 = arith.constant 0 : i32
    %c0_i32_1 = arith.constant 0 : i32
    %c0_i32_2 = arith.constant 0 : i32
    return %c0_i32, %c0_i32_0, %c0_i32_1 : i32, i32, i32
  }
  func.func @transform_5(%arg0: i32) -> (i32, i32) {
    %c0_i32 = arith.constant 0 : i32
    %c0_i32_0 = arith.constant 0 : i32
    %c0_i32_1 = arith.constant 0 : i32
    return %c0_i32, %c0_i32_0 : i32, i32
  }
  func.func @transform_6(%arg0: i32) -> (i32, i32) {
    %c0_i32 = arith.constant 0 : i32
    %c0_i32_0 = arith.constant 0 : i32
    %c0_i32_1 = arith.constant 0 : i32
    return %c0_i32, %c0_i32_0 : i32, i32
  }
  func.func @transform_7(%arg0: i32) -> (i32, i32) {
    %c0_i32 = arith.constant 0 : i32
    %c0_i32_0 = arith.constant 0 : i32
    %c0_i32_1 = arith.constant 0 : i32
    return %c0_i32, %c0_i32_0 : i32, i32
  }
}

</mosaic_0001>

<bundles_post_ra>
// kernel: tpu_custom_call.1
= control target key start
LH: loop header
LB: loop body
LE: loop exit
PB: predicated region body
PF: predicated region fallthrough
CT: control target
= control target key end

     0   :  { %v1557_v7 = vmov 0.0   ;;  %v1003_v12 = vmov 0   ;;  %vm42_vm0 = vcmask 130048   ;;  %s1549_s0 = inlined_call_operand.vmem [shape: f32[16,512], index: 0, kind: input, shape index: {}]   ;;  %s1550_s1 = inlined_call_operand.vmem [shape: f32[8,16], index: 1, kind: input, shape index: {}]   ;;  %s1551_s2 = inlined_call_operand.vmem [shape: f32[8,1], index: 2, kind: input, shape index: {}]   ;;  %s1552_s3 = inlined_call_operand.vmem [shape: f32[9,8,1], index: 3, kind: input, shape index: {}]   ;;  %s1553_s4 = inlined_call_operand.vmem [shape: f32[9,1,512], index: 4, kind: input, shape index: {}]   ;;  %s1554_s5 = inlined_call_operand.vmem [shape: f32[32,8], index: 5, kind: input, shape index: {}]   ;;  %s1555_s6 = inlined_call_operand.vmem [shape: f32[32,1], index: 6, kind: input, shape index: {}]   ;;  %s1556_s7 = inlined_call_operand.hbm [shape: f32[32,512], index: 7, kind: output, shape index: {}]  }
   0x1   :  { %v29_v0 = vld [vmem:[%s1549_s0 + $0x8] sm:$0xff]  ;;  %v31_v2 = vld [vmem:[%s1549_s0 + $0x18] sm:$0xff]  ;;  %v28_v5 = vld [vmem:[%s1549_s0] sm:$0xff]  ;;  %110 = vmatprep.mubr.f32.mxu0 %v1557_v7  ;;  %181 = vmatprep.mubr.f32.mxu1 %v1557_v7 }
   0x2   :  { %v33_v1 = vld [vmem:[%s1549_s0 + $0x28] sm:$0xff]  ;;  %v35_v4 = vld [vmem:[%s1549_s0 + $0x38] sm:$0xff]  ;;  %v32_v6 = vld [vmem:[%s1549_s0 + $0x20] sm:$0xff]  ;;  %976 = vset.pattern.permute.xlu0 %v1003_v12  ;;  %977 = vset.pattern.permute.xlu1 %v1003_v12 }
   0x3   :  { %v955_v3 = vpack.c.bf16 %v33_v1, %v29_v0  ;;  %v959_v8 = vpack.c.bf16 %v35_v4, %v31_v2  ;;  %v957_v9 = vpack.c.bf16 %v32_v6, %v28_v5  ;;  %v30_v10 = vld [vmem:[%s1549_s0 + $0x10] sm:$0xff]  ;;  %v36_v14 = vld [vmem:[%s1551_s2] sm:$0xff] }
   0x4   :  { %v34_v11 = vld [vmem:[%s1549_s0 + $0x30] sm:$0xff]  ;;  %v27_v15 = vld [vmem:[%s1550_s1] sm:$0xff]  ;;  %39 = vperm.xlu0 %976, %v36_v14  }
   0x5   :  { %956 = vmatprep.subr.bf16.mxu0 %v955_v3  ;;  %v961_v13 = vpack.c.bf16 %v34_v11, %v30_v10  ;;  %960 = vmatprep.subr.bf16.mxu1 %v959_v8  ;;  %v932_v16 = vld [vmem:[%s1552_s3 + $0x20] sm:$0xff] }
   0x6   :  { %958 = vmatpush1.bf16.msra.mxu0 %v957_v9  ;;  %v222_v17 = vld [vmem:[%s1552_s3] sm:$0xff]  ;;  %200 = vperm.xlu1 %977, %v932_v16  }
   0x7   :  { %962 = vmatpush1.bf16.msra.mxu1 %v961_v13 }
   0x8   :  { %12 = vsyncpa [#allocation3], 0  ;;  %v933_v18 = vld [vmem:[%s1552_s3 + $0x8] sm:$0xff]  ;;  %225 = vperm.xlu0 %976, %v222_v17   ;;  %v935_v19 = vld [vmem:[%s1552_s3 + $0x10] sm:$0xff]  ;;  %s1005_s13 = smov 17   ;;  %s1006_s14 = smov 1   ;;  %v215_v3 = vlaneseq }
   0x9   :  { %930 = vmatmul.mubr.msk.f32.vlgmr.msra.gmra.mrb[0].mxu0 %vm42_vm0, %v27_v15  ;;  %v937_v20 = vld [vmem:[%s1552_s3 + $0x18] sm:$0xff]  ;;  %v939_v21 = vld [vmem:[%s1552_s3 + $0x28] sm:$0xff]  ;;  %v941_v22 = vld [vmem:[%s1552_s3 + $0x30] sm:$0xff]  ;;  %s1007_s15 = smov 15   ;;  %s1008_s16 = smov 113   ;;  %vm675_vm9 = vcmask 64512  }
   0xa   :  { %931 = vmatmul.mubr.msk.f32.vlgmr.msra.gmra.mrb[0].mxu1 %vm42_vm0, %v27_v15  ;;  %752 = vmatprep.mubr.f32.mxu0 %v1557_v7  ;;  %v943_v23 = vld [vmem:[%s1552_s3 + $0x38] sm:$0xff]  ;;  %v945_v24 = vld [vmem:[%s1552_s3 + $0x40] sm:$0xff]  ;;  %s1004_s3 = smov 16   ;;  %s1009_s17 = smov 127   ;;  %v652_v48 = vld [vmem:[%s1555_s6 + $0x8] sm:$0xff]  ;;  %v235_v6 = vshrl.u32 %v215_v3, 7 }
   0xb   :  { %841 = vmatprep.mubr.f32.mxu1 %v1557_v7  ;;  %279 = vperm.xlu1 %977, %v933_v18   ;;  %s1010_s18 = smov 112   ;;  %s1011_s19 = smov 111   ;;  %v651_v47 = vld [vmem:[%s1555_s6] sm:$0xff]  ;;  %v653_v49 = vld [vmem:[%s1555_s6 + $0x10] sm:$0xff]  ;;  %v654_v50 = vld [vmem:[%s1555_s6 + $0x18] sm:$0xff]  ;;  %v1176_v10 = vand.u32 127, %v215_v3 }
   0xc   :  { %334 = vperm.xlu0 %976, %v935_v19   ;;  %v1178_v11 = vsub.s32 1, %v235_v6  ;;  %v1180_v12 = vsub.s32 2, %v235_v6  ;;  %v1185_v13 = vld [vmem:[%s1553_s4 + $0x4] sm:$0xf]  ;;  %v1187_v14 = vsub.s32 0, %v235_v6  ;;  %v1189_v15 = vsub.s32 3, %v235_v6 }
   0xd   :  { %v1194_v16 = vld [vmem:[%s1553_s4] sm:$0xf]  ;;  %v1199_v17 = vld [vmem:[%s1553_s4 + $0xc] sm:$0xf]  ;;  %vm270_vm1 = vcmp.lt.s32.totalorder %v1176_v10, 16  ;;  %vm217_vm2 = vcmp.lt.s32.totalorder %v1176_v10, 17 }
   0xe   :  { %v296_v19 = vrot.slane %v1185_v13, %v1178_v11  ;;  %vm380_vm3 = vcmp.lt.s32.totalorder %v1176_v10, 1  ;;  %vm325_vm4 = vcmp.lt.s32.totalorder %v1176_v10, 15  ;;  %vm490_vm5 = vcmp.lt.s32.totalorder %v1176_v10, 113 }
   0xf   :  { %389 = vperm.xlu1 %977, %v937_v20   ;;  %vm435_vm6 = vcmp.lt.s32.totalorder %v1176_v10, 127  ;;  %vm545_vm7 = vcmp.lt.s32.totalorder %v1176_v10, 112  ;;  %vm600_vm8 = vcmp.lt.s32.totalorder %v1176_v10, 111 }
  0x10   :  { %444 = vperm.xlu0 %976, %v939_v21   ;;  %v300_v21 = vrot.slane %v1185_v13, %v1180_v12 }
  0x13   :  { %499 = vperm.xlu1 %977, %v941_v22   ;;  %v292_v22 = vrot.slane %v1185_v13, %v1187_v14 }
  0x14   :  { %554 = vperm.xlu0 %976, %v943_v23   ;;  %v304_v23 = vrot.slane %v1185_v13, %v1189_v15 }
  0x17   :  { %609 = vperm.xlu1 %977, %v945_v24   ;;  %v1216_v24 = vld [vmem:[%s1553_s4 + $0x8] sm:$0xf] }
  0x83   :  { %v40_v25 = vpop.permute.xlu0 %39 }
  0x85   :  { %v201_v37 = vpop.permute.xlu1 %200 }
  0x87   :  { %v1136_v51 = vpop.permute.xlu0 %225 }
  0x8a   :  { %v1138_v52 = vpop.permute.xlu1 %279 }
  0x8b   :  { %v1140_v53 = vpop.permute.xlu0 %334 }
  0x8e   :  { %v1142_v54 = vpop.permute.xlu1 %389 }
  0x8f   :  { %v1144_v55 = vpop.permute.xlu0 %444 }
  0x92   :  { %v1146_v56 = vpop.permute.xlu1 %499 }
  0x93   :  { %v1148_v57 = vpop.permute.xlu0 %554 }
  0x96   :  { %v1150_v58 = vpop.permute.xlu1 %609 }
  0xdc   :  { %v112_v26 = vpop.f32.mrb[0].mxu0 }
  0xdd   :  { %v113_v27 = vadd.f32 %v112_v26, %v40_v25  ;;  %v183_v28 = vpop.f32.mrb[0].mxu1  ;;  %v114_v29 = vpop.f32.mrb[1].mxu0  ;;  %v245_v26 = vrot.slane %v1194_v16, %v1180_v12 }
  0xde   :  { %v184_v30 = vadd.f32 %v183_v28, %v40_v25  ;;  %v115_v31 = vadd.f32 %v114_v29, %v40_v25  ;;  %v185_v32 = vpop.f32.mrb[1].mxu1  ;;  %v1228_v28 = vld [vmem:[%s1553_s4 + $0x18] sm:$0xf] }
  0xdf   :  { %v188_v33 = vmax.f32 %v113_v27, 0.0  ;;  %v186_v34 = vadd.f32 %v185_v32, %v40_v25  ;;  %v241_v25 = vrot.slane %v1194_v16, %v1178_v11 }
  0xe0   :  { %v190_v35 = vmax.f32 %v184_v30, 0.0  ;;  %v189_v36 = vmax.f32 %v115_v31, 0.0  ;;  %v237_v30 = vrot.slane %v1194_v16, %v1187_v14  ;;  %v249_v31 = vrot.slane %v1194_v16, %v1189_v15 }
  0xe1   :  { %v192_v38 = vmin.f32 %v188_v33, 6.0  ;;  %v191_v39 = vmax.f32 %v186_v34, 0.0  ;;  %v1241_v33 = vld [vmem:[%s1553_s4 + $0x14] sm:$0xf] }
  0xe2   :  { %v194_v40 = vmin.f32 %v190_v35, 6.0  ;;  %v193_v41 = vmin.f32 %v189_v36, 6.0 }
  0xe3   :  { %v195_v42 = vmin.f32 %v191_v39, 6.0  ;;  %v1116_v43 = vmul.f32 %v201_v37, %v192_v38  ;;  %262 = vrot.lane.b32.xlu0 %v192_v38, %s1004_s3  ;;  %207 = vrot.lane.b32.xlu1 %v192_v38, %s1005_s13 }
  0xe4   :  { %v1118_v44 = vmul.f32 %v201_v37, %v193_v41  ;;  %v1120_v45 = vmul.f32 %v201_v37, %v194_v40 }
  0xe5   :  { %v1122_v46 = vmul.f32 %v201_v37, %v195_v42 }
  0xe7   :  { %266 = vrot.lane.b32.xlu0 %v194_v40, %s1004_s3  ;;  %211 = vrot.lane.b32.xlu1 %v194_v40, %s1005_s13 }
  0xeb   :  { %372 = vrot.lane.b32.xlu0 %v192_v38, %s1006_s14  ;;  %317 = vrot.lane.b32.xlu1 %v192_v38, %s1007_s15 }
  0xef   :  { %376 = vrot.lane.b32.xlu0 %v194_v40, %s1006_s14  ;;  %321 = vrot.lane.b32.xlu1 %v194_v40, %s1007_s15 }
  0xf3   :  { %482 = vrot.lane.b32.xlu0 %v192_v38, %s1008_s16  ;;  %427 = vrot.lane.b32.xlu1 %v192_v38, %s1009_s17 }
  0xf7   :  { %486 = vrot.lane.b32.xlu0 %v194_v40, %s1008_s16  ;;  %431 = vrot.lane.b32.xlu1 %v194_v40, %s1009_s17 }
  0xfb   :  { %537 = vrot.lane.b32.xlu0 %v192_v38, %s1010_s18  ;;  %264 = vrot.lane.b32.xlu1 %v193_v41, %s1004_s3 }
  0xff   :  { %541 = vrot.lane.b32.xlu0 %v194_v40, %s1010_s18  ;;  %268 = vrot.lane.b32.xlu1 %v195_v42, %s1004_s3 }
 0x103   :  { %209 = vrot.lane.b32.xlu0 %v193_v41, %s1005_s13  ;;  %374 = vrot.lane.b32.xlu1 %v193_v41, %s1006_s14 }
 0x107   :  { %213 = vrot.lane.b32.xlu0 %v195_v42, %s1005_s13  ;;  %378 = vrot.lane.b32.xlu1 %v195_v42, %s1006_s14 }
 0x10b   :  { %319 = vrot.lane.b32.xlu0 %v193_v41, %s1007_s15  ;;  %484 = vrot.lane.b32.xlu1 %v193_v41, %s1008_s16 }
 0x10f   :  { %323 = vrot.lane.b32.xlu0 %v195_v42, %s1007_s15  ;;  %488 = vrot.lane.b32.xlu1 %v195_v42, %s1008_s16 }
 0x113   :  { %429 = vrot.lane.b32.xlu0 %v193_v41, %s1009_s17  ;;  %539 = vrot.lane.b32.xlu1 %v193_v41, %s1010_s18 }
 0x117   :  { %433 = vrot.lane.b32.xlu0 %v195_v42, %s1009_s17  ;;  %543 = vrot.lane.b32.xlu1 %v195_v42, %s1010_s18 }
 0x11b   :  { %592 = vrot.lane.b32.xlu0 %v192_v38, %s1011_s19  ;;  %594 = vrot.lane.b32.xlu1 %v193_v41, %s1011_s19 }
 0x11f   :  { %596 = vrot.lane.b32.xlu0 %v194_v40, %s1011_s19  ;;  %598 = vrot.lane.b32.xlu1 %v195_v42, %s1011_s19  ;;  %v1257_v40 = vld [vmem:[%s1553_s4 + $0x1c] sm:$0xf] }
 0x123   :  { %657 = vperm.xlu0 %976, %v651_v47   ;;  %662 = vperm.xlu1 %977, %v652_v48  }
 0x127   :  { %667 = vperm.xlu0 %976, %v653_v49   ;;  %672 = vperm.xlu1 %977, %v654_v50   ;;  %v1287_v50 = vld [vmem:[%s1553_s4 + $0x20] sm:$0xf] }
 0x128   :  { %v622_v32 = vrot.slane %v1287_v50, %v1187_v14  ;;  %v630_v42 = vrot.slane %v1287_v50, %v1180_v12 }
 0x155   :  { %v1152_v59 = vpop.permute.xlu0 %262  ;;  %v1154_v60 = vpop.permute.xlu1 %207 }
 0x159   :  { %v1156_v61 = vpop.permute.xlu0 %266  ;;  %v1158_v62 = vpop.permute.xlu1 %211 }
 0x15d   :  { %v1160_v63 = vpop.permute.xlu0 %372  ;;  %v1162_v0 = vpop.permute.xlu1 %317 }
 0x161   :  { %v1164_v1 = vpop.permute.xlu0 %376  ;;  %v1166_v2 = vpop.permute.xlu1 %321 }
 0x165   :  { %v1168_v4 = vpop.permute.xlu0 %482  ;;  %v1170_v5 = vpop.permute.xlu1 %427 }
 0x169   :  { %v1172_v8 = vpop.permute.xlu0 %486  ;;  %v1174_v9 = vpop.permute.xlu1 %431 }
 0x16d   :  { %v1201_v18 = vpop.permute.xlu0 %537  ;;  %v265_v20 = vpop.permute.xlu1 %264 }
 0x16e   :  { %v273_v34 = vsel %vm270_vm1, %v1152_v59, %v265_v20  ;;  %v272_v41 = vsel %vm270_vm1, %v265_v20, %v1156_v61 }
 0x16f   :  { %v283_v20 = vmul.f32 %v1138_v52, %v273_v34  ;;  %v284_v3 = vmul.f32 %v1138_v52, %v272_v41 }
 0x171   :  { %v1246_v35 = vpop.permute.xlu0 %541  ;;  %v269_v36 = vpop.permute.xlu1 %268  ;;  %v310_v29 = vmul.f32 %v296_v19, %v283_v20  ;;  %v311_v39 = vmul.f32 %v300_v21, %v284_v3 }
 0x172   :  { %v274_v34 = vsel %vm270_vm1, %v269_v36, %v1152_v59  ;;  %v271_v47 = vsel %vm270_vm1, %v1156_v61, %v269_v36  ;;  %v626_v59 = vrot.slane %v1287_v50, %v1178_v11 }
 0x175   :  { %v210_v6 = vpop.permute.xlu0 %209  ;;  %v375_v48 = vpop.permute.xlu1 %374 }
 0x176   :  { %v219_v7 = vsel %vm217_vm2, %v210_v6, %v1158_v62  ;;  %v220_v41 = vsel %vm217_vm2, %v1154_v60, %v210_v6  ;;  %v282_v6 = vmul.f32 %v1138_v52, %v274_v34  ;;  %v383_v61 = vsel %vm380_vm3, %v1160_v63, %v375_v48 }
 0x177   :  { %v229_v49 = vmul.f32 %v1136_v51, %v220_v41  ;;  %v230_v37 = vmul.f32 %v1136_v51, %v219_v7  ;;  %v285_v41 = vmul.f32 %v1138_v52, %v271_v47  ;;  %v382_v19 = vsel %vm380_vm3, %v375_v48, %v1164_v1 }
 0x178   :  { %v309_v47 = vmul.f32 %v292_v22, %v282_v6  ;;  %v1560_v6 = vrot.slane %v1216_v24, %v1178_v11 }
 0x179   :  { %v255_v38 = vmul.f32 %v241_v25, %v229_v49  ;;  %v256_v27 = vmul.f32 %v245_v26, %v230_v37  ;;  %v214_v7 = vpop.permute.xlu0 %213  ;;  %v379_v36 = vpop.permute.xlu1 %378 }
 0x17a   :  { %v218_v20 = vsel %vm217_vm2, %v1158_v62, %v214_v7  ;;  %v221_v21 = vsel %vm217_vm2, %v214_v7, %v1154_v60  ;;  %v393_v62 = vmul.f32 %v1142_v54, %v383_v61  ;;  %v381_v60 = vsel %vm380_vm3, %v1164_v1, %v379_v36 }
 0x17b   :  { %v259_v25 = vadd.f32 %v255_v38, %v1118_v44  ;;  %v260_v26 = vadd.f32 %v256_v27, %v1120_v45  ;;  %v228_v37 = vmul.f32 %v1136_v51, %v221_v21  ;;  %v231_v52 = vmul.f32 %v1136_v51, %v218_v20 }
 0x17c   :  { %v384_v44 = vsel %vm380_vm3, %v379_v36, %v1160_v63  ;;  %v312_v1 = vmul.f32 %v304_v23, %v285_v41  ;;  %v394_v63 = vmul.f32 %v1142_v54, %v382_v19  ;;  %v395_v23 = vmul.f32 %v1142_v54, %v381_v60 }
 0x17d   :  { %v254_v45 = vmul.f32 %v237_v30, %v228_v37  ;;  %v257_v51 = vmul.f32 %v249_v31, %v231_v52  ;;  %v320_v27 = vpop.permute.xlu0 %319  ;;  %v314_v22 = vadd.f32 %v310_v29, %v259_v25  ;;  %v315_v38 = vadd.f32 %v311_v39, %v260_v26  ;;  %v485_v48 = vpop.permute.xlu1 %484 }
 0x17e   :  { %v327_v30 = vsel %vm325_vm4, %v320_v27, %v1166_v2  ;;  %v328_v16 = vsel %vm325_vm4, %v1162_v0, %v320_v27  ;;  %v392_v13 = vmul.f32 %v1142_v54, %v384_v44  ;;  %v492_v3 = vsel %vm490_vm5, %v485_v48, %v1172_v8 }
 0x17f   :  { %v258_v29 = vadd.f32 %v254_v45, %v1116_v43  ;;  %v261_v31 = vadd.f32 %v257_v51, %v1122_v46  ;;  %v338_v39 = vmul.f32 %v1140_v53, %v328_v16  ;;  %v339_v49 = vmul.f32 %v1140_v53, %v327_v30 }
 0x180   :  { %v493_v34 = vsel %vm490_vm5, %v1168_v4, %v485_v48  ;;  %v1559_v43 = vrot.slane %v1199_v17, %v1178_v11  ;;  %v1561_v7 = vrot.slane %v1216_v24, %v1180_v12  ;;  %v1562_v37 = vrot.slane %v1199_v17, %v1180_v12 }
 0x181   :  { %v365_v61 = vmul.f32 %v1560_v6, %v338_v39  ;;  %v502_v36 = vmul.f32 %v1146_v56, %v493_v34  ;;  %v324_v41 = vpop.permute.xlu0 %323  ;;  %v489_v19 = vpop.permute.xlu1 %488  ;;  %v313_v20 = vadd.f32 %v309_v47, %v258_v29  ;;  %v316_v21 = vadd.f32 %v312_v1, %v261_v31 }
 0x182   :  { %v420_v46 = vmul.f32 %v1559_v43, %v393_v62  ;;  %v366_v54 = vmul.f32 %v1561_v7, %v339_v49  ;;  %v326_v25 = vsel %vm325_vm4, %v1166_v2, %v324_v41  ;;  %v329_v26 = vsel %vm325_vm4, %v324_v41, %v1162_v0 }
 0x183   :  { %v421_v52 = vmul.f32 %v1562_v37, %v394_v63  ;;  %v369_v62 = vadd.f32 %v365_v61, %v314_v22  ;;  %v503_v44 = vmul.f32 %v1146_v56, %v492_v3  ;;  %v1563_v47 = vrot.slane %v1199_v17, %v1187_v14 }
 0x184   :  { %v370_v60 = vadd.f32 %v366_v54, %v315_v38  ;;  %v1564_v2 = vrot.slane %v1199_v17, %v1189_v15  ;;  %v337_v0 = vmul.f32 %v1140_v53, %v329_v26  ;;  %v340_v27 = vmul.f32 %v1140_v53, %v326_v25 }
 0x185   :  { %v419_v45 = vmul.f32 %v1563_v47, %v392_v13  ;;  %v1565_v22 = vrot.slane %v1228_v28, %v1187_v14  ;;  %v491_v48 = vsel %vm490_vm5, %v1172_v8, %v489_v19  ;;  %v430_v1 = vpop.permute.xlu0 %429  ;;  %v424_v63 = vadd.f32 %v420_v46, %v369_v62  ;;  %v540_v30 = vpop.permute.xlu1 %539 }
 0x186   :  { %v422_v51 = vmul.f32 %v1564_v2, %v395_v23  ;;  %v425_v16 = vadd.f32 %v421_v52, %v370_v60  ;;  %v1566_v17 = vrot.slane %v1216_v24, %v1187_v14  ;;  %v1567_v31 = vrot.slane %v1216_v24, %v1189_v15 }
 0x187   :  { %v529_v38 = vmul.f32 %v1565_v22, %v502_v36  ;;  %v437_v39 = vsel %vm435_vm6, %v430_v1, %v1174_v9  ;;  %v438_v8 = vsel %vm435_vm6, %v1170_v5, %v430_v1  ;;  %v1568_v49 = vrot.slane %v1228_v28, %v1178_v11 }
 0x188   :  { %v364_v29 = vmul.f32 %v1566_v17, %v337_v0  ;;  %v367_v53 = vmul.f32 %v1567_v31, %v340_v27  ;;  %v494_v23 = vsel %vm490_vm5, %v489_v19, %v1168_v4  ;;  %v447_v3 = vmul.f32 %v1144_v55, %v438_v8 }
 0x189   :  { %v530_v13 = vmul.f32 %v1568_v49, %v503_v44  ;;  %v448_v24 = vmul.f32 %v1144_v55, %v437_v39  ;;  %v547_v46 = vsel %vm545_vm7, %v540_v30, %v1246_v35  ;;  %v548_v6 = vsel %vm545_vm7, %v1201_v18, %v540_v30  ;;  %v434_v19 = vpop.permute.xlu0 %433 }
 0x18a   :  { %v368_v34 = vadd.f32 %v364_v29, %v313_v20  ;;  %v371_v43 = vadd.f32 %v367_v53, %v316_v21  ;;  %v504_v61 = vmul.f32 %v1146_v56, %v491_v48  ;;  %v1569_v7 = vrot.slane %v1241_v33, %v1187_v14  ;;  %v544_v20 = vpop.permute.xlu1 %543 }
 0x18b   :  { %v1570_v54 = vrot.slane %v1241_v33, %v1178_v11  ;;  %v557_v41 = vmul.f32 %v1148_v57, %v548_v6  ;;  %v436_v26 = vsel %vm435_vm6, %v1174_v9, %v434_v19  ;;  %v439_v37 = vsel %vm435_vm6, %v434_v19, %v1170_v5 }
 0x18c   :  { %v474_v4 = vmul.f32 %v1569_v7, %v447_v3  ;;  %v423_v21 = vadd.f32 %v419_v45, %v368_v34  ;;  %v426_v25 = vadd.f32 %v422_v51, %v371_v43  ;;  %v505_v52 = vmul.f32 %v1146_v56, %v494_v23 }
 0x18d   :  { %v475_v36 = vmul.f32 %v1570_v54, %v448_v24  ;;  %v558_v60 = vmul.f32 %v1148_v57, %v547_v46  ;;  %v449_v44 = vmul.f32 %v1144_v55, %v436_v26  ;;  %v450_v2 = vmul.f32 %v1144_v55, %v439_v37  ;;  %v593_v27 = vpop.permute.xlu0 %592  ;;  %v647_v37 = vld [vmem:[%s1554_s5] sm:$0xff] }
 0x18e   :  { %v478_v47 = vadd.f32 %v474_v4, %v423_v21  ;;  %v546_v45 = vsel %vm545_vm7, %v1246_v35, %v544_v20  ;;  %v549_v9 = vsel %vm545_vm7, %v544_v20, %v1201_v18  ;;  %v1571_v5 = vrot.slane %v1241_v33, %v1180_v12  ;;  %v595_v22 = vpop.permute.xlu1 %594 }
 0x18f   :  { %v479_v62 = vadd.f32 %v475_v36, %v424_v63  ;;  %v559_v51 = vmul.f32 %v1148_v57, %v546_v45  ;;  %v560_v0 = vmul.f32 %v1148_v57, %v549_v9  ;;  %v1572_v1 = vrot.slane %v1257_v40, %v1187_v14 }
 0x190   :  { %v476_v56 = vmul.f32 %v1571_v5, %v449_v44  ;;  %v533_v55 = vadd.f32 %v529_v38, %v478_v47  ;;  %v1573_v63 = vrot.slane %v1241_v33, %v1189_v15  ;;  %v603_v30 = vsel %vm600_vm8, %v593_v27, %v595_v22 }
 0x191   :  { %v534_v48 = vadd.f32 %v530_v13, %v479_v62  ;;  %v584_v35 = vmul.f32 %v1572_v1, %v557_v41  ;;  %v1574_v17 = vrot.slane %v1228_v28, %v1180_v12  ;;  %v612_v31 = vmul.f32 %v1150_v58, %v603_v30  ;;  %v597_v43 = vpop.permute.xlu0 %596 }
 0x192   :  { %v477_v18 = vmul.f32 %v1573_v63, %v450_v2  ;;  %v480_v57 = vadd.f32 %v476_v56, %v425_v16  ;;  %v634_v38 = vrot.slane %v1287_v50, %v1189_v15  ;;  %v1575_v53 = vrot.slane %v1228_v28, %v1189_v15  ;;  %v599_v46 = vpop.permute.xlu1 %598 }
 0x193   :  { %v531_v29 = vmul.f32 %v1574_v17, %v504_v61  ;;  %v1576_v33 = vrot.slane %v1257_v40, %v1178_v11  ;;  %v588_v49 = vadd.f32 %v584_v35, %v533_v55  ;;  %v1577_v3 = vrot.slane %v1257_v40, %v1180_v12  ;;  %v648_v11 = vld [vmem:[%s1554_s5 + $0x8] sm:$0xff]  ;;  %v649_v12 = vld [vmem:[%s1554_s5 + $0x10] sm:$0xff] }
 0x194   :  { %v532_v39 = vmul.f32 %v1575_v53, %v505_v52  ;;  %v481_v13 = vadd.f32 %v477_v18, %v426_v25  ;;  %v1578_v24 = vrot.slane %v1257_v40, %v1189_v15  ;;  %v639_v28 = vmul.f32 %v622_v32, %v612_v31 }
 0x195   :  { %v585_v8 = vmul.f32 %v1576_v33, %v558_v60  ;;  %v535_v23 = vadd.f32 %v531_v29, %v480_v57  ;;  %v586_v16 = vmul.f32 %v1577_v3, %v559_v51  ;;  %v602_v6 = vsel %vm600_vm8, %v595_v22, %v597_v43 }
 0x196   :  { %v587_v34 = vmul.f32 %v1578_v24, %v560_v0  ;;  %v601_v61 = vsel %vm600_vm8, %v597_v43, %v599_v46  ;;  %v604_v7 = vsel %vm600_vm8, %v599_v46, %v593_v27  ;;  %v536_v4 = vadd.f32 %v532_v39, %v481_v13 }
 0x197   :  { %v590_v54 = vadd.f32 %v586_v16, %v535_v23  ;;  %v643_v36 = vadd.f32 %v639_v28, %v588_v49  ;;  %v613_v15 = vmul.f32 %v1150_v58, %v602_v6  ;;  %v614_v40 = vmul.f32 %v1150_v58, %v601_v61 }
 0x198   :  { %v615_v14 = vmul.f32 %v1150_v58, %v604_v7  ;;  %v591_v32 = vadd.f32 %v587_v34, %v536_v4  ;;  %v589_v10 = vadd.f32 %v585_v8, %v534_v48  ;;  %v1579_v58 = vmov 0.0  }
 0x199   :  { %v640_v41 = vmul.f32 %v626_v59, %v613_v15  ;;  %v641_v19 = vmul.f32 %v630_v42, %v614_v40  ;;  %v650_v42 = vld [vmem:[%s1554_s5 + $0x18] sm:$0xff]  ;;  %s1012_s5 = smov [#allocation2]  }
 0x19a   :  { %v642_v20 = vmul.f32 %v634_v38, %v615_v14  ;;  %s919_s0 = sshll.u32 %s1012_s5, 4  ;;  %s920_s0 = int_to_ptr.vmem [resolvable:$true] %s919_s0 }
 0x19b   :  { %v645_v21 = vadd.f32 %v641_v19, %v590_v54  ;;  %v644_v25 = vadd.f32 %v640_v41, %v589_v10  ;;  %s978_s23 = scalar_lea.vmem %s920_s0, 2048  ;;  %p983_p1 = scmp.lt.s32.totalorder %s920_s0, %s920_s0 }
 0x19c   :  { %v646_v26 = vadd.f32 %v642_v20, %v591_v32  ;;  %p979_p0 = scmp.ne.s32.totalorder %s920_s0, %s978_s23  ;;  %p984_p2 = scmp.lt.s32.totalorder %s978_s23, %s978_s23 }
 0x19d   :  { %688 = vmatprep.subr.mxu0 %v644_v25 }
 0x19e   :  { %777 = vmatprep.subr.mxu1 %v646_v26  ;;  %689 = vmatpush1.msra.mxu0 %v643_v36  ;;  %p985_p3 = por %p984_p2, %p983_p1 }
 0x19f   :  { %778 = vmatpush1.msra.mxu1 %v645_v21  ;;  %947 = vmatmul.mubr.msk.f32.vlgmr.msra.gmra.mrb[2].mxu0 %vm675_vm9, %v647_v37 }
 0x1a0   :  { %951 = vmatmul.mubr.msk.f32.vlgmr.msra.gmra.mrb[2].mxu1 %vm675_vm9, %v647_v37  ;;  %758 = vmatprep.mubr.f32.mxu0 %v1579_v58  ;;  %p986_p4 = pnand %p985_p3, %p979_p0 }
 0x1a1   :  { %847 = vmatprep.mubr.f32.mxu1 %v1579_v58 }
 0x1a2   :  { %v658_v50 = vpop.permute.xlu0 %657  ;;  %v663_v5 = vpop.permute.xlu1 %662 }
 0x1a3   :  { %948 = vmatmul.mubr.msk.f32.gmra.mrb[4].mxu0 %vm675_vm9, %v648_v11 }
 0x1a4   :  { %952 = vmatmul.mubr.msk.f32.gmra.mrb[4].mxu1 %vm675_vm9, %v648_v11  ;;  %764 = vmatprep.mubr.f32.mxu0 %v1579_v58 }
 0x1a5   :  { %853 = vmatprep.mubr.f32.mxu1 %v1579_v58 }
 0x1a6   :  { %v668_v38 = vpop.permute.xlu0 %667  ;;  %v673_v7 = vpop.permute.xlu1 %672 }
 0x1a7   :  { %949 = vmatmul.mubr.msk.f32.gmra.mrb[6].mxu0 %vm675_vm9, %v649_v12 }
 0x1a8   :  { %953 = vmatmul.mubr.msk.f32.gmra.mrb[6].mxu1 %vm675_vm9, %v649_v12  ;;  %770 = vmatprep.mubr.f32.mxu0 %v1579_v58 }
 0x1a9   :  { %859 = vmatprep.mubr.f32.mxu1 %v1579_v58 }
 0x1ab   :  { %950 = vmatmul.mubr.msk.f32.gmra.mrb[8].mxu0 %vm675_vm9, %v650_v42 }
 0x1ac   :  { %954 = vmatmul.mubr.msk.f32.gmra.mrb[8].mxu1 %vm675_vm9, %v650_v42 }
 0x272   :  { %v754_v59 = vpop.f32.mrb[2].mxu0 }
 0x273   :  { %v755_v52 = vadd.f32 %v754_v59, %v658_v50  ;;  %v843_v62 = vpop.f32.mrb[2].mxu1  ;;  %v756_v60 = vpop.f32.mrb[3].mxu0 }
 0x274   :  { %v844_v44 = vadd.f32 %v843_v62, %v658_v50  ;;  %v757_v47 = vadd.f32 %v756_v60, %v658_v50  ;;  %v845_v2 = vpop.f32.mrb[3].mxu1 }
 0x275   :  { %v866_v45 = vmax.f32 %v755_v52, 0.0  ;;  %v846_v9 = vadd.f32 %v845_v2, %v658_v50 }
 0x276   :  { %v868_v56 = vmax.f32 %v844_v44, 0.0  ;;  %v867_v51 = vmax.f32 %v757_v47, 0.0  ;;  %v760_v0 = vpop.f32.mrb[4].mxu0 }
 0x277   :  { %v882_v27 = vmin.f32 %v866_v45, 6.0  ;;  %v869_v22 = vmax.f32 %v846_v9, 0.0  ;;  %v761_v48 = vadd.f32 %v760_v0, %v663_v5  ;;  %v849_v55 = vpop.f32.mrb[4].mxu1  ;;  %v762_v1 = vpop.f32.mrb[5].mxu0 }
 0x278   :  { %v884_v35 = vmin.f32 %v868_v56, 6.0  ;;  %v883_v63 = vmin.f32 %v867_v51, 6.0  ;;  %v850_v18 = vadd.f32 %v849_v55, %v663_v5  ;;  %v763_v30 = vadd.f32 %v762_v1, %v663_v5  ;;  %v851_v17 = vpop.f32.mrb[5].mxu1 }
 0x279   :  { %898 = vst [vmem:[#allocation2] sm:$0xff] %v882_v27  ;;  %v885_v29 = vmin.f32 %v869_v22, 6.0  ;;  %v870_v57 = vmax.f32 %v761_v48, 0.0  ;;  %v852_v31 = vadd.f32 %v851_v17, %v663_v5 }
 0x27a   :  { %900 = vst [vmem:[#allocation2 + $0x10] sm:$0xff] %v884_v35  ;;  %899 = vst [vmem:[#allocation2 + $0x8] sm:$0xff] %v883_v63  ;;  %v872_v53 = vmax.f32 %v850_v18, 0.0  ;;  %v871_v39 = vmax.f32 %v763_v30, 0.0  ;;  %v766_v33 = vpop.f32.mrb[6].mxu0 }
 0x27b   :  { %901 = vst [vmem:[#allocation2 + $0x18] sm:$0xff] %v885_v29  ;;  %v886_v8 = vmin.f32 %v870_v57, 6.0  ;;  %v873_v49 = vmax.f32 %v852_v31, 0.0  ;;  %v767_v13 = vadd.f32 %v766_v33, %v668_v38  ;;  %v855_v23 = vpop.f32.mrb[6].mxu1  ;;  %v768_v3 = vpop.f32.mrb[7].mxu0 }
 0x27c   :  { %v888_v16 = vmin.f32 %v872_v53, 6.0  ;;  %v887_v24 = vmin.f32 %v871_v39, 6.0  ;;  %v856_v34 = vadd.f32 %v855_v23, %v668_v38  ;;  %v769_v28 = vadd.f32 %v768_v3, %v668_v38  ;;  %v857_v43 = vpop.f32.mrb[7].mxu1 }
 0x27d   :  { %902 = vst [vmem:[#allocation2 + $0x20] sm:$0xff] %v886_v8  ;;  %v889_v46 = vmin.f32 %v873_v49, 6.0  ;;  %v874_v6 = vmax.f32 %v767_v13, 0.0  ;;  %v858_v61 = vadd.f32 %v857_v43, %v668_v38 }
 0x27e   :  { %904 = vst [vmem:[#allocation2 + $0x30] sm:$0xff] %v888_v16  ;;  %903 = vst [vmem:[#allocation2 + $0x28] sm:$0xff] %v887_v24  ;;  %v876_v4 = vmax.f32 %v856_v34, 0.0  ;;  %v875_v54 = vmax.f32 %v769_v28, 0.0  ;;  %v772_v36 = vpop.f32.mrb[8].mxu0 }
 0x27f   :  { %905 = vst [vmem:[#allocation2 + $0x38] sm:$0xff] %v889_v46  ;;  %v890_v15 = vmin.f32 %v874_v6, 6.0  ;;  %v877_v40 = vmax.f32 %v858_v61, 0.0  ;;  %v773_v14 = vadd.f32 %v772_v36, %v673_v7  ;;  %v861_v32 = vpop.f32.mrb[8].mxu1  ;;  %v774_v41 = vpop.f32.mrb[9].mxu0 }
 0x280   :  { %v892_v19 = vmin.f32 %v876_v4, 6.0  ;;  %v891_v10 = vmin.f32 %v875_v54, 6.0  ;;  %v862_v20 = vadd.f32 %v861_v32, %v673_v7  ;;  %v775_v21 = vadd.f32 %v774_v41, %v673_v7  ;;  %v863_v25 = vpop.f32.mrb[9].mxu1 }
 0x281   :  { %906 = vst [vmem:[#allocation2 + $0x40] sm:$0xff] %v890_v15  ;;  %v893_v26 = vmin.f32 %v877_v40, 6.0  ;;  %v878_v37 = vmax.f32 %v773_v14, 0.0  ;;  %v864_v58 = vadd.f32 %v863_v25, %v673_v7 }
 0x282   :  { %908 = vst [vmem:[#allocation2 + $0x50] sm:$0xff] %v892_v19  ;;  %907 = vst [vmem:[#allocation2 + $0x48] sm:$0xff] %v891_v10  ;;  %v880_v11 = vmax.f32 %v862_v20, 0.0  ;;  %v879_v12 = vmax.f32 %v775_v21, 0.0 }
 0x283   :  { %909 = vst [vmem:[#allocation2 + $0x58] sm:$0xff] %v893_v26  ;;  %v894_v42 = vmin.f32 %v878_v37, 6.0  ;;  %v881_v50 = vmax.f32 %v864_v58, 0.0 }
 0x284   :  { %v896_v59 = vmin.f32 %v880_v11, 6.0  ;;  %v895_v52 = vmin.f32 %v879_v12, 6.0 }
 0x285   :  { %910 = vst [vmem:[#allocation2 + $0x60] sm:$0xff] %v894_v42  ;;  %v897_v62 = vmin.f32 %v881_v50, 6.0 }
 0x286   :  { %912 = vst [vmem:[#allocation2 + $0x70] sm:$0xff] %v896_v59  ;;  %911 = vst [vmem:[#allocation2 + $0x68] sm:$0xff] %v895_v52 }
 0x287   :  { %913 = vst [vmem:[#allocation2 + $0x78] sm:$0xff] %v897_v62 }
 0x288   :  { %989 = shalt.err (!%p986_p4)
}
 0x289   :  { %s990_s1 = scalar_lea.hbm %s1556_s7, 2048 }
 0x28a   :  { %p991_p5 = scmp.ne.s32.totalorder %s1556_s7, %s990_s1  ;;  %p994_p6 = scmp.lt.u32.totalorder %s990_s1, %s1556_s7 }
 0x28c   :  { %p996_p7 = pnand %p994_p6, %p991_p5 }
 0x28e   :  { %999 = shalt.err (!%p996_p7)
}
 0x28f   :  { %s1013_s28 = smov 512   ;;  %s1014_s29 = smov 32  }
 0x290   :  { %925 = dma.vmem_to_hbm [thread:$0]  %s920_s0, 2048, %s1556_s7, [#allocation3], %s1013_s28, %s1013_s28, %s1014_s29  }
 0x291   :  { %1000 = dma.done.wait [#allocation3], 2048  }
 0x292   :  { %1001 = vsyncadd [#allocation3], 4294965248 }
 0x293   :  { %929 = vsyncpa [#allocation3], 1 }

</bundles_post_ra>
